<compile_context>
chip_gen: v7x
topology: tpu7x:2x2x1
jax: 0.10.0
libtpu: 0.0.40
codegen_flags: <defaults>
</compile_context>

<pallas_src>
import functools

import jax
import jax.numpy as jnp
from jax.experimental import pallas as pl
from jax.experimental.pallas import tpu as pltpu

LOG_STD_MIN = -20.0
LOG_STD_MAX = 2.0
LANE = 128
SUBLANE = 8


def _round_up(x, m):
    return (x + m - 1) // m * m


def _policy_kernel(x_ref, w1_ref, b1_ref, w2_ref, b2_ref, wh_ref, bh_ref,
                   out_ref, *, action_size):
    x = x_ref[...]

    # linear1 + relu
    h1 = jnp.dot(x, w1_ref[...], preferred_element_type=jnp.float32) + b1_ref[...]
    h1 = jnp.maximum(h1, 0.0)

    # linear2 + relu
    h2 = jnp.dot(h1, w2_ref[...], preferred_element_type=jnp.float32) + b2_ref[...]
    h2 = jnp.maximum(h2, 0.0)

    # fused head: [TB, HP] = [mean | log_std | zero padding]
    head = jnp.dot(h2, wh_ref[...], preferred_element_type=jnp.float32) + bh_ref[...]

    # Clamp only the log_std columns (col >= action_size).  Padded zero
    # columns are unaffected (clip(0) == 0) and are sliced away in the
    # wrapper.  The column mask is a compile-time-constant pattern.
    col = jax.lax.broadcasted_iota(jnp.int32, (1, head.shape[1]), 1)
    clamped = jnp.clip(head, LOG_STD_MIN, LOG_STD_MAX)
    out_ref[...] = jnp.where(col >= action_size, clamped, head)


def gaussian_policy_forward(state, params, *, tile_b=256):
    """state: [B, state_size] f32 -> (mean [B, A], log_std [B, A])."""
    w1, b1, w2, b2, wm, bm, ws, bs = params
    B, S = state.shape
    L1 = w1.shape[1]
    L2 = w2.shape[1]
    A = wm.shape[1]

    # Fuse the two heads and zero-pad the fused output width to a lane-dense
    # (multiple-of-128) width so the output store is unmasked.
    wh = jnp.concatenate([wm, ws], axis=1)          # [L2, 2A]
    bh = jnp.concatenate([bm, bs], axis=1)          # [1, 2A]
    HP = _round_up(max(2 * A, LANE), LANE)
    if HP != 2 * A:
        wh = jnp.pad(wh, ((0, 0), (0, HP - 2 * A)))
        bh = jnp.pad(bh, ((0, 0), (0, HP - 2 * A)))

    # Batch tiling (sublane aligned); pad batch up to a multiple of the tile.
    TB = min(tile_b, _round_up(B, SUBLANE))
    TB = _round_up(TB, SUBLANE)
    Bp = _round_up(B, TB)
    state_in = jnp.pad(state, ((0, Bp - B), (0, 0))) if Bp != B else state

    grid = (Bp // TB,)
    const = lambda i: (0, 0)  # weights/biases: same block every step -> resident
    kernel = functools.partial(_policy_kernel, action_size=A)

    flops_per_tile = 2 * TB * (S * L1 + L1 * L2 + L2 * HP)
    bytes_per_tile = 4 * (TB * S + TB * HP)
    weight_bytes = 4 * (S * L1 + L1 + L1 * L2 + L2 + L2 * HP + HP)
    cost = pl.CostEstimate(
        flops=flops_per_tile * grid[0],
        transcendentals=0,
        bytes_accessed=bytes_per_tile * grid[0] + weight_bytes,
    )

    head = pl.pallas_call(
        kernel,
        out_shape=jax.ShapeDtypeStruct((Bp, HP), jnp.float32),
        grid=grid,
        in_specs=[
            pl.BlockSpec((TB, S), lambda i: (i, 0)),   # state tile (batch-varying)
            pl.BlockSpec((S, L1), const),              # W1
            pl.BlockSpec((1, L1), const),              # b1
            pl.BlockSpec((L1, L2), const),             # W2
            pl.BlockSpec((1, L2), const),              # b2
            pl.BlockSpec((L2, HP), const),             # fused head weights
            pl.BlockSpec((1, HP), const),              # fused head bias
        ],
        out_specs=pl.BlockSpec((TB, HP), lambda i: (i, 0)),
        compiler_params=pltpu.CompilerParams(
            dimension_semantics=("parallel",)),
        cost_estimate=cost,
    )(state_in, w1, b1, w2, b2, wh, bh)

    mean = head[:B, :A]
    log_std = head[:B, A:2 * A]
    return mean, log_std


def init_params(key, state_size, action_size, layer1_size, layer2_size,
                init_w=0.003):
    """Deterministic init mirroring the PyTorch module's __init__."""
    ks = jax.random.split(key, 8)

    def linear_default(kw, kb, fan_in, fan_out):
        # PyTorch nn.Linear default: U(-1/sqrt(fan_in), 1/sqrt(fan_in))
        bound = 1.0 / jnp.sqrt(jnp.float32(fan_in))
        w = jax.random.uniform(kw, (fan_in, fan_out), jnp.float32, -bound, bound)
        b = jax.random.uniform(kb, (1, fan_out), jnp.float32, -bound, bound)
        return w, b

    def linear_small(kw, kb, fan_in, fan_out):
        # heads: U(-init_w, init_w)
        w = jax.random.uniform(kw, (fan_in, fan_out), jnp.float32, -init_w, init_w)
        b = jax.random.uniform(kb, (1, fan_out), jnp.float32, -init_w, init_w)
        return w, b

    w1, b1 = linear_default(ks[0], ks[1], state_size, layer1_size)
    w2, b2 = linear_default(ks[2], ks[3], layer1_size, layer2_size)
    wm, bm = linear_small(ks[4], ks[5], layer2_size, action_size)
    ws, bs = linear_small(ks[6], ks[7], layer2_size, action_size)
    return (w1, b1, w2, b2, wm, bm, ws, bs)


def reference_forward(state, params):
    w1, b1, w2, b2, wm, bm, ws, bs = params
    h1 = jnp.maximum(state @ w1 + b1, 0.0)
    h2 = jnp.maximum(h1 @ w2 + b2, 0.0)
    mean = h2 @ wm + bm
    log_std = jnp.clip(h2 @ ws + bs, LOG_STD_MIN, LOG_STD_MAX)
    return mean, log_std


if __name__ == "__main__":
    key = jax.random.PRNGKey(0)
    k_params, k_state = jax.random.split(key)

    batch = 64
    state_size = 16
    action_size = 4
    layer1_size = 256   # module default p_fc1_units
    layer2_size = 256   # module default p_fc2_units

    params = init_params(k_params, state_size, action_size,
                         layer1_size, layer2_size)
    state = jax.random.normal(k_state, (batch, state_size), jnp.float32)

    fwd = jax.jit(functools.partial(gaussian_policy_forward, tile_b=32))
    mean, log_std = fwd(state, params)
    jax.block_until_ready((mean, log_std))

    ref_mean, ref_log_std = reference_forward(state, params)
    assert mean.shape == (batch, action_size)
    assert log_std.shape == (batch, action_size)
    assert jnp.allclose(mean, ref_mean, atol=2e-3, rtol=2e-3)
    assert jnp.allclose(log_std, ref_log_std, atol=2e-3, rtol=2e-3)

    print("KERNEL_OK")
</pallas_src>

<mosaic_0001>
module attributes {stable_mosaic.version = 11 : i64} {
  func.func @_policy_kernel(%arg0: i32, %arg1: memref<32x16xf32, #tpu.memory_space<vmem>>, %arg2: memref<16x256xf32, #tpu.memory_space<vmem>>, %arg3: memref<1x256xf32, #tpu.memory_space<vmem>>, %arg4: memref<256x256xf32, #tpu.memory_space<vmem>>, %arg5: memref<1x256xf32, #tpu.memory_space<vmem>>, %arg6: memref<256x128xf32, #tpu.memory_space<vmem>>, %arg7: memref<1x128xf32, #tpu.memory_space<vmem>>, %arg8: memref<32x128xf32, #tpu.memory_space<vmem>>) attributes {dimension_semantics = [#tpu.dimension_semantics<parallel>], iteration_bounds = array<i64: 2>, scalar_prefetch = 0 : i64, scratch_operands = 0 : i64, tpu.core_type = #tpu.core_type<tc>, window_params = [{transform_indices = @transform_0, window_bounds = array<i64: 32, 16>}, {pipeline_mode = #tpu.pipeline_mode<synchronous>, transform_indices = @transform_1, window_bounds = array<i64: 16, 256>}, {pipeline_mode = #tpu.pipeline_mode<synchronous>, transform_indices = @transform_2, window_bounds = array<i64: 1, 256>}, {pipeline_mode = #tpu.pipeline_mode<synchronous>, transform_indices = @transform_3, window_bounds = array<i64: 256, 256>}, {pipeline_mode = #tpu.pipeline_mode<synchronous>, transform_indices = @transform_4, window_bounds = array<i64: 1, 256>}, {pipeline_mode = #tpu.pipeline_mode<synchronous>, transform_indices = @transform_5, window_bounds = array<i64: 256, 128>}, {pipeline_mode = #tpu.pipeline_mode<synchronous>, transform_indices = @transform_6, window_bounds = array<i64: 1, 128>}, {transform_indices = @transform_7, window_bounds = array<i64: 32, 128>}]} {
    %c0 = arith.constant 0 : index
    %c0_0 = arith.constant 0 : index
    %0 = vector.load %arg1[%c0, %c0_0] : memref<32x16xf32, #tpu.memory_space<vmem>>, vector<32x16xf32>
    %c0_1 = arith.constant 0 : index
    %c0_2 = arith.constant 0 : index
    %1 = vector.load %arg2[%c0_1, %c0_2] : memref<16x256xf32, #tpu.memory_space<vmem>>, vector<16x256xf32>
    %cst = arith.constant dense<0.000000e+00> : vector<32x256xf32>
    %2 = tpu.matmul %0, %1, %cst {dimension_numbers = #tpu.dot_dimension_numbers<[1], [0], [0], [1], [0, 0, 1, 1], [], []>} : vector<32x16xf32>, vector<16x256xf32>, vector<32x256xf32> -> vector<32x256xf32>
    %c0_3 = arith.constant 0 : index
    %c0_4 = arith.constant 0 : index
    %3 = vector.load %arg3[%c0_3, %c0_4] : memref<1x256xf32, #tpu.memory_space<vmem>>, vector<1x256xf32>
    %4 = vector.broadcast %3 : vector<1x256xf32> to vector<32x256xf32>
    %5 = arith.addf %2, %4 : vector<32x256xf32>
    %cst_5 = arith.constant 0.000000e+00 : f32
    %6 = vector.broadcast %cst_5 : f32 to vector<32x256xf32>
    %7 = arith.maximumf %5, %6 : vector<32x256xf32>
    %c0_6 = arith.constant 0 : index
    %c0_7 = arith.constant 0 : index
    %8 = vector.load %arg4[%c0_6, %c0_7] : memref<256x256xf32, #tpu.memory_space<vmem>>, vector<256x256xf32>
    %cst_8 = arith.constant dense<0.000000e+00> : vector<32x256xf32>
    %9 = tpu.matmul %7, %8, %cst_8 {dimension_numbers = #tpu.dot_dimension_numbers<[1], [0], [0], [1], [0, 0, 1, 1], [], []>} : vector<32x256xf32>, vector<256x256xf32>, vector<32x256xf32> -> vector<32x256xf32>
    %c0_9 = arith.constant 0 : index
    %c0_10 = arith.constant 0 : index
    %10 = vector.load %arg5[%c0_9, %c0_10] : memref<1x256xf32, #tpu.memory_space<vmem>>, vector<1x256xf32>
    %11 = vector.broadcast %10 : vector<1x256xf32> to vector<32x256xf32>
    %12 = arith.addf %9, %11 : vector<32x256xf32>
    %cst_11 = arith.constant 0.000000e+00 : f32
    %13 = vector.broadcast %cst_11 : f32 to vector<32x256xf32>
    %14 = arith.maximumf %12, %13 : vector<32x256xf32>
    %c0_12 = arith.constant 0 : index
    %c0_13 = arith.constant 0 : index
    %15 = vector.load %arg6[%c0_12, %c0_13] : memref<256x128xf32, #tpu.memory_space<vmem>>, vector<256x128xf32>
    %cst_14 = arith.constant dense<0.000000e+00> : vector<32x128xf32>
    %16 = tpu.matmul %14, %15, %cst_14 {dimension_numbers = #tpu.dot_dimension_numbers<[1], [0], [0], [1], [0, 0, 1, 1], [], []>} : vector<32x256xf32>, vector<256x128xf32>, vector<32x128xf32> -> vector<32x128xf32>
    %c0_15 = arith.constant 0 : index
    %c0_16 = arith.constant 0 : index
    %17 = vector.load %arg7[%c0_15, %c0_16] : memref<1x128xf32, #tpu.memory_space<vmem>>, vector<1x128xf32>
    %18 = vector.broadcast %17 : vector<1x128xf32> to vector<32x128xf32>
    %19 = arith.addf %16, %18 : vector<32x128xf32>
    %20 = tpu.iota {dimensions = array<i32: 1>} : vector<1x128xi32>
    %cst_17 = arith.constant -2.000000e+01 : f32
    %cst_18 = arith.constant 2.000000e+00 : f32
    %21 = vector.broadcast %cst_17 : f32 to vector<32x128xf32>
    %22 = arith.maximumf %21, %19 : vector<32x128xf32>
    %23 = vector.broadcast %cst_18 : f32 to vector<32x128xf32>
    %24 = arith.minimumf %23, %22 : vector<32x128xf32>
    %c4_i32 = arith.constant 4 : i32
    %25 = vector.broadcast %c4_i32 : i32 to vector<1x128xi32>
    %26 = arith.cmpi sge, %20, %25 : vector<1x128xi32>
    %27 = vector.shape_cast %26 : vector<1x128xi1> to vector<1x128xi1>
    %28 = vector.broadcast %27 : vector<1x128xi1> to vector<32x128xi1>
    %29 = arith.select %28, %24, %19 : vector<32x128xi1>, vector<32x128xf32>
    %c0_19 = arith.constant 0 : index
    %c0_20 = arith.constant 0 : index
    %30 = vector.load %arg8[%c0_19, %c0_20] : memref<32x128xf32, #tpu.memory_space<vmem>>, vector<32x128xf32>
    tpu.vector_store %arg8[%c0_19, %c0_20], %29 {strides = array<i32>} : memref<32x128xf32, #tpu.memory_space<vmem>>, vector<32x128xf32>,
    return
  }
  func.func @transform_0(%arg0: i32) -> (i32, i32) {
    %c0_i32 = arith.constant 0 : i32
    %c0_i32_0 = arith.constant 0 : i32
    return %arg0, %c0_i32 : i32, i32
  }
  func.func @transform_1(%arg0: i32) -> (i32, i32) {
    %c0_i32 = arith.constant 0 : i32
    %c0_i32_0 = arith.constant 0 : i32
    %c0_i32_1 = arith.constant 0 : i32
    return %c0_i32, %c0_i32_0 : i32, i32
  }
  func.func @transform_2(%arg0: i32) -> (i32, i32) {
    %c0_i32 = arith.constant 0 : i32
    %c0_i32_0 = arith.constant 0 : i32
    %c0_i32_1 = arith.constant 0 : i32
    return %c0_i32, %c0_i32_0 : i32, i32
  }
  func.func @transform_3(%arg0: i32) -> (i32, i32) {
    %c0_i32 = arith.constant 0 : i32
    %c0_i32_0 = arith.constant 0 : i32
    %c0_i32_1 = arith.constant 0 : i32
    return %c0_i32, %c0_i32_0 : i32, i32
  }
  func.func @transform_4(%arg0: i32) -> (i32, i32) {
    %c0_i32 = arith.constant 0 : i32
    %c0_i32_0 = arith.constant 0 : i32
    %c0_i32_1 = arith.constant 0 : i32
    return %c0_i32, %c0_i32_0 : i32, i32
  }
  func.func @transform_5(%arg0: i32) -> (i32, i32) {
    %c0_i32 = arith.constant 0 : i32
    %c0_i32_0 = arith.constant 0 : i32
    %c0_i32_1 = arith.constant 0 : i32
    return %c0_i32, %c0_i32_0 : i32, i32
  }
  func.func @transform_6(%arg0: i32) -> (i32, i32) {
    %c0_i32 = arith.constant 0 : i32
    %c0_i32_0 = arith.constant 0 : i32
    %c0_i32_1 = arith.constant 0 : i32
    return %c0_i32, %c0_i32_0 : i32, i32
  }
  func.func @transform_7(%arg0: i32) -> (i32, i32) {
    %c0_i32 = arith.constant 0 : i32
    %c0_i32_0 = arith.constant 0 : i32
    return %arg0, %c0_i32 : i32, i32
  }
}

</mosaic_0001>

<bundles_post_ra>
// kernel: gaussian_policy_forward.1
= control target key start
LH: loop header
LB: loop body
LE: loop exit
PB: predicated region body
PF: predicated region fallthrough
CT: control target
= control target key end

     0   :  { %s1004_s24 = smov 0   ;;  %s1353_s0 = inlined_call_operand.vmem [shape: f32[64,16], index: 0, kind: input, shape index: {}]   ;;  %s1354_s1 = inlined_call_operand.vmem [shape: f32[16,256], index: 1, kind: input, shape index: {}]   ;;  %s1355_s2 = inlined_call_operand.vmem [shape: f32[1,256], index: 2, kind: input, shape index: {}]   ;;  %s1356_s3 = inlined_call_operand.vmem [shape: f32[256,256], index: 3, kind: input, shape index: {}]   ;;  %s1357_s4 = inlined_call_operand.vmem [shape: f32[1,256], index: 4, kind: input, shape index: {}]   ;;  %s1358_s5 = inlined_call_operand.vmem [shape: f32[256,128], index: 5, kind: input, shape index: {}]   ;;  %s1359_s6 = inlined_call_operand.vmem [shape: f32[1,128], index: 6, kind: input, shape index: {}]   ;;  %s1360_s7 = inlined_call_operand.vmem [shape: f32[64,128], index: 7, kind: output, shape index: {}]  }
   0x1 LB: > { %s786_s25 = sadd.s32 4294967295, %s961_s24   ;;  %p790_p0 = scmp.ge.s32.totalorder %s961_s24, 1  ;;  %s961_s24 = sphi %s1004_s24, %s17_s24  }
   0x2   : > { %p238_p1 = scmp.lt.s32.totalorder %s961_s24, 3 }
   0x4   : > { %p239_p2 = pnand %p790_p0, %p238_p1 }
   0x5   : > { %v287_v0 = vld [vmem:[%s1354_s1 + $0x8] sm:$0xff] (!%p239_p2)  ;;  %v289_v1 = vld [vmem:[%s1354_s1 + $0x18] sm:$0xff] (!%p239_p2)  ;;  %v286_v2 = vld [vmem:[%s1354_s1] sm:$0xff] (!%p239_p2)  ;;  %s791_s9 = sshll.u32 (!%p239_p2), %s786_s25, 2  ;;  %v963_v5 = vmov (!%p239_p2), 0.0   ;;  %vm302_vm0 = vcmask (!%p239_p2), 130048  }
   0x6   : > { %242 = sbr.rel (%p239_p2) target bundleno = 688 (0x2b0), region = 48  ;;  %v846_v3 = vpack.c.bf16 (!%p239_p2), %v289_v1, %v287_v0  ;;  %v288_v4 = vld [vmem:[%s1354_s1 + $0x10] sm:$0xff] (!%p239_p2)  ;;  %379 = vmatprep.mubr.f32.mxu0 (!%p239_p2), %v963_v5  ;;  %p271_p3 = scmp.lt.s32.totalorder (!%p239_p2), %s791_s9, 7  ;;  %v413_v6 = vld [vmem:[%s1356_s3 + $0x8] sm:$0xff] (!%p239_p2)  ;;  %v415_v7 = vld [vmem:[%s1356_s3 + $0x18] sm:$0xff] (!%p239_p2) }
   0x7   : > { %v848_v8 = vpack.c.bf16 (!%p239_p2), %v288_v4, %v286_v2  ;;  %v850_v9 = vpack.c.bf16 (!%p239_p2), %v415_v7, %v413_v6  ;;  %v412_v10 = vld [vmem:[%s1356_s3] sm:$0xff] (!%p239_p2)  ;;  %v414_v11 = vld [vmem:[%s1356_s3 + $0x10] sm:$0xff] (!%p239_p2)  ;;  %v417_v12 = vld [vmem:[%s1356_s3 + $0x28] sm:$0xff] (!%p239_p2) }
   0x8   : > { %847 = vmatprep.subr.bf16.mxu0 (!%p239_p2), %v846_v3  ;;  %v852_v13 = vpack.c.bf16 (!%p239_p2), %v414_v11, %v412_v10  ;;  %v419_v14 = vld [vmem:[%s1356_s3 + $0x38] sm:$0xff] (!%p239_p2)  ;;  %v416_v15 = vld [vmem:[%s1356_s3 + $0x20] sm:$0xff] (!%p239_p2)  ;;  %v418_v16 = vld [vmem:[%s1356_s3 + $0x30] sm:$0xff] (!%p239_p2) }
   0x9   : > { %849 = vmatpush1.bf16.msra.mxu0 (!%p239_p2), %v848_v8  ;;  %851 = vmatprep.subr.bf16.mxu1 (!%p239_p2), %v850_v9  ;;  %v854_v17 = vpack.c.bf16 (!%p239_p2), %v419_v14, %v417_v12  ;;  %v421_v18 = vld [vmem:[%s1356_s3 + $0x48] sm:$0xff] (!%p239_p2)  ;;  %v423_v19 = vld [vmem:[%s1356_s3 + $0x58] sm:$0xff] (!%p239_p2)  ;;  %v856_v20 = vpack.c.bf16 (!%p239_p2), %v418_v16, %v416_v15  ;;  %v420_v22 = vld [vmem:[%s1356_s3 + $0x40] sm:$0xff] (!%p239_p2) }
   0xa   : > { %853 = vmatpush1.bf16.msra.mxu1 (!%p239_p2), %v852_v13  ;;  %v858_v21 = vpack.c.bf16 (!%p239_p2), %v423_v19, %v421_v18  ;;  %v422_v23 = vld [vmem:[%s1356_s3 + $0x50] sm:$0xff] (!%p239_p2)  ;;  %v425_v25 = vld [vmem:[%s1356_s3 + $0x68] sm:$0xff] (!%p239_p2)  ;;  %v427_v26 = vld [vmem:[%s1356_s3 + $0x78] sm:$0xff] (!%p239_p2) }
   0xb   : > { %855 = vmatprep.subr.bf16.mxu1 (!%p239_p2), %v854_v17  ;;  %v860_v28 = vpack.c.bf16 (!%p239_p2), %v422_v23, %v420_v22  ;;  %v862_v29 = vpack.c.bf16 (!%p239_p2), %v427_v26, %v425_v25  ;;  %v424_v30 = vld [vmem:[%s1356_s3 + $0x60] sm:$0xff] (!%p239_p2)  ;;  %v426_v31 = vld [vmem:[%s1356_s3 + $0x70] sm:$0xff] (!%p239_p2)  ;;  %v429_v32 = vld [vmem:[%s1356_s3 + $0x88] sm:$0xff] (!%p239_p2) }
   0xc   : > { %v431_v33 = vld [vmem:[%s1356_s3 + $0x98] sm:$0xff] (!%p239_p2)  ;;  %v864_v35 = vpack.c.bf16 (!%p239_p2), %v426_v31, %v424_v30  ;;  %v428_v37 = vld [vmem:[%s1356_s3 + $0x80] sm:$0xff] (!%p239_p2)  ;;  %v430_v38 = vld [vmem:[%s1356_s3 + $0x90] sm:$0xff] (!%p239_p2) }
   0xd   : > { %s1362_s9 = smov (!%p271_p3, %s791_s9), 7  ;;  %v866_v36 = vpack.c.bf16 %v431_v33, %v429_v32  ;;  %v433_v39 = vld [vmem:[%s1356_s3 + $0xa8] sm:$0xff]  ;;  %v435_v40 = vld [vmem:[%s1356_s3 + $0xb8] sm:$0xff]  ;;  %v868_v42 = vpack.c.bf16 %v430_v38, %v428_v37  ;;  %v432_v44 = vld [vmem:[%s1356_s3 + $0xa0] sm:$0xff] }
   0xe   : > { %s792_s11 = sshll.u32 %s1362_s9, 3  ;;  %857 = vmatpush1.bf16.msra.mxu1 %v856_v20  ;;  %v870_v43 = vpack.c.bf16 %v435_v40, %v433_v39  ;;  %v434_v45 = vld [vmem:[%s1356_s3 + $0xb0] sm:$0xff]  ;;  %v437_v46 = vld [vmem:[%s1356_s3 + $0xc8] sm:$0xff]  ;;  %v439_v47 = vld [vmem:[%s1356_s3 + $0xd8] sm:$0xff] }
   0xf   : > { %s1062_s14 = scalar_lea.vmem %s1353_s0, %s792_s11  ;;  %859 = vmatprep.subr.bf16.mxu1 %v858_v21  ;;  %v872_v48 = vpack.c.bf16 %v434_v45, %v432_v44  ;;  %v874_v49 = vpack.c.bf16 %v439_v47, %v437_v46  ;;  %v436_v50 = vld [vmem:[%s1356_s3 + $0xc0] sm:$0xff]  ;;  %v438_v51 = vld [vmem:[%s1356_s3 + $0xd0] sm:$0xff]  ;;  %v441_v52 = vld [vmem:[%s1356_s3 + $0xe8] sm:$0xff]  ;;  %s280_s16 = scalar_lea.vmem %s1360_s7, %s792_s11 }
  0x10   : > { %v282_v24 = vld [vmem:[%s1062_s14] sm:$0xff]  ;;  %v283_v27 = vld [vmem:[%s1062_s14 + $0x8] sm:$0xff]  ;;  %v284_v34 = vld [vmem:[%s1062_s14 + $0x10] sm:$0xff]  ;;  %v876_v54 = vpack.c.bf16 %v438_v51, %v436_v50 }
  0x11   : > { %795 = vmatmul.mubr.msk.f32.vlgmr.msra.gmra.mrb[0].mxu0 %vm302_vm0, %v282_v24  ;;  %v285_v41 = vld [vmem:[%s1062_s14 + $0x18] sm:$0xff]  ;;  %v440_v56 = vld [vmem:[%s1356_s3 + $0xe0] sm:$0xff]  ;;  %v442_v57 = vld [vmem:[%s1356_s3 + $0xf0] sm:$0xff] }
  0x12   : > { %385 = vmatprep.mubr.f32.mxu0 %v963_v5  ;;  %861 = vmatpush1.bf16.msra.mxu1 %v860_v28  ;;  %v443_v53 = vld [vmem:[%s1356_s3 + $0xf8] sm:$0xff]  ;;  %v445_v58 = vld [vmem:[%s1356_s3 + $0x108] sm:$0xff]  ;;  %v880_v60 = vpack.c.bf16 %v442_v57, %v440_v56  ;;  %v444_v62 = vld [vmem:[%s1356_s3 + $0x100] sm:$0xff] }
  0x13   : > { %863 = vmatprep.subr.bf16.mxu1 %v862_v29  ;;  %v878_v55 = vpack.c.bf16 %v443_v53, %v441_v52  ;;  %v447_v59 = vld [vmem:[%s1356_s3 + $0x118] sm:$0xff]  ;;  %v446_v63 = vld [vmem:[%s1356_s3 + $0x110] sm:$0xff]  ;;  %v449_v0 = vld [vmem:[%s1356_s3 + $0x128] sm:$0xff] }
  0x14   : > { %v882_v61 = vpack.c.bf16 %v447_v59, %v445_v58  ;;  %v451_v1 = vld [vmem:[%s1356_s3 + $0x138] sm:$0xff]  ;;  %v884_v2 = vpack.c.bf16 %v446_v63, %v444_v62  ;;  %v448_v4 = vld [vmem:[%s1356_s3 + $0x120] sm:$0xff]  ;;  %v453_v6 = vld [vmem:[%s1356_s3 + $0x148] sm:$0xff] }
  0x15   : > { %796 = vmatmul.mubr.msk.f32.gmra.mrb[2].mxu0 %vm302_vm0, %v283_v27  ;;  %v886_v3 = vpack.c.bf16 %v451_v1, %v449_v0  ;;  %v455_v7 = vld [vmem:[%s1356_s3 + $0x158] sm:$0xff]  ;;  %v452_v10 = vld [vmem:[%s1356_s3 + $0x140] sm:$0xff]  ;;  %v454_v11 = vld [vmem:[%s1356_s3 + $0x150] sm:$0xff] }
  0x16   : > { %391 = vmatprep.mubr.f32.mxu0 %v963_v5  ;;  %865 = vmatpush1.bf16.msra.mxu1 %v864_v35  ;;  %v890_v9 = vpack.c.bf16 %v455_v7, %v453_v6  ;;  %v457_v12 = vld [vmem:[%s1356_s3 + $0x168] sm:$0xff]  ;;  %v459_v13 = vld [vmem:[%s1356_s3 + $0x178] sm:$0xff]  ;;  %v892_v14 = vpack.c.bf16 %v454_v11, %v452_v10  ;;  %v456_v16 = vld [vmem:[%s1356_s3 + $0x160] sm:$0xff] }
  0x17   : > { %867 = vmatprep.subr.bf16.mxu1 %v866_v36  ;;  %v894_v15 = vpack.c.bf16 %v459_v13, %v457_v12  ;;  %v458_v17 = vld [vmem:[%s1356_s3 + $0x170] sm:$0xff]  ;;  %v461_v18 = vld [vmem:[%s1356_s3 + $0x188] sm:$0xff]  ;;  %v463_v19 = vld [vmem:[%s1356_s3 + $0x198] sm:$0xff] }
  0x18   : > { %v896_v20 = vpack.c.bf16 %v458_v17, %v456_v16  ;;  %v898_v21 = vpack.c.bf16 %v463_v19, %v461_v18  ;;  %v460_v22 = vld [vmem:[%s1356_s3 + $0x180] sm:$0xff]  ;;  %v462_v23 = vld [vmem:[%s1356_s3 + $0x190] sm:$0xff]  ;;  %v465_v24 = vld [vmem:[%s1356_s3 + $0x1a8] sm:$0xff]  ;;  %v292_v18 = vlaneseq }
  0x19   : > { %797 = vmatmul.mubr.msk.f32.gmra.mrb[4].mxu0 %vm302_vm0, %v284_v34  ;;  %v467_v25 = vld [vmem:[%s1356_s3 + $0x1b8] sm:$0xff]  ;;  %v900_v26 = vpack.c.bf16 %v462_v23, %v460_v22  ;;  %v464_v28 = vld [vmem:[%s1356_s3 + $0x1a0] sm:$0xff]  ;;  %v466_v29 = vld [vmem:[%s1356_s3 + $0x1b0] sm:$0xff] }
  0x1a   : > { %397 = vmatprep.mubr.f32.mxu0 %v963_v5  ;;  %869 = vmatpush1.bf16.msra.mxu1 %v868_v42  ;;  %v450_v5 = vld [vmem:[%s1356_s3 + $0x130] sm:$0xff]  ;;  %v902_v27 = vpack.c.bf16 %v467_v25, %v465_v24  ;;  %v469_v30 = vld [vmem:[%s1356_s3 + $0x1c8] sm:$0xff]  ;;  %v471_v31 = vld [vmem:[%s1356_s3 + $0x1d8] sm:$0xff]  ;;  %v904_v32 = vpack.c.bf16 %v466_v29, %v464_v28  ;;  %v293_v19 = vshrl.u32 %v292_v18, 7 }
  0x1b   : > { %871 = vmatprep.subr.bf16.mxu1 %v870_v43  ;;  %v888_v8 = vpack.c.bf16 %v450_v5, %v448_v4  ;;  %v906_v33 = vpack.c.bf16 %v471_v31, %v469_v30  ;;  %v468_v34 = vld [vmem:[%s1356_s3 + $0x1c0] sm:$0xff]  ;;  %v470_v35 = vld [vmem:[%s1356_s3 + $0x1d0] sm:$0xff]  ;;  %v473_v37 = vld [vmem:[%s1356_s3 + $0x1e8] sm:$0xff] }
  0x1c   : > { %v908_v36 = vpack.c.bf16 %v470_v35, %v468_v34  ;;  %v475_v38 = vld [vmem:[%s1356_s3 + $0x1f8] sm:$0xff]  ;;  %v472_v40 = vld [vmem:[%s1356_s3 + $0x1e0] sm:$0xff]  ;;  %v602_v44 = vld [vmem:[%s1358_s5 + $0x88] sm:$0xff]  ;;  %v298_v22 = vsub.s32 1, %v293_v19 }
  0x1d   : > { %798 = vmatmul.mubr.msk.f32.gmra.mrb[6].mxu0 %vm302_vm0, %v285_v41  ;;  %v910_v39 = vpack.c.bf16 %v475_v38, %v473_v37  ;;  %v474_v41 = vld [vmem:[%s1356_s3 + $0x1f0] sm:$0xff]  ;;  %v601_v43 = vld [vmem:[%s1358_s5 + $0x80] sm:$0xff]  ;;  %v586_v47 = vld [vmem:[%s1358_s5 + $0x8] sm:$0xff] }
  0x1e   : > { %873 = vmatpush1.bf16.msra.mxu1 %v872_v48  ;;  %v912_v42 = vpack.c.bf16 %v474_v41, %v472_v40  ;;  %v585_v45 = vld [vmem:[%s1358_s5] sm:$0xff]  ;;  %v914_v46 = vpack.c.bf16 %v602_v44, %v601_v43  ;;  %v603_v48 = vld [vmem:[%s1358_s5 + $0x90] sm:$0xff]  ;;  %v588_v53 = vld [vmem:[%s1358_s5 + $0x18] sm:$0xff] }
  0x1f   : > { %875 = vmatprep.subr.bf16.mxu1 %v874_v49  ;;  %v604_v49 = vld [vmem:[%s1358_s5 + $0x98] sm:$0xff]  ;;  %v916_v50 = vpack.c.bf16 %v586_v47, %v585_v45  ;;  %v587_v52 = vld [vmem:[%s1358_s5 + $0x10] sm:$0xff]  ;;  %v589_v58 = vld [vmem:[%s1358_s5 + $0x20] sm:$0xff] }
  0x20   : > { %v918_v51 = vpack.c.bf16 %v604_v49, %v603_v48  ;;  %915 = vmatprep.subr.bf16.mxu0 %v914_v46  ;;  %v920_v56 = vpack.c.bf16 %v588_v53, %v587_v52  ;;  %v590_v59 = vld [vmem:[%s1358_s5 + $0x28] sm:$0xff]  ;;  %v591_v0 = vld [vmem:[%s1358_s5 + $0x30] sm:$0xff]  ;;  %v592_v1 = vld [vmem:[%s1358_s5 + $0x38] sm:$0xff] }
  0x21   : > { %917 = vmatpush3.bf16.msra.mxu0 %v916_v50  ;;  %v924_v62 = vpack.c.bf16 %v590_v59, %v589_v58  ;;  %v928_v4 = vpack.c.bf16 %v592_v1, %v591_v0  ;;  %v593_v6 = vld [vmem:[%s1358_s5 + $0x40] sm:$0xff]  ;;  %v594_v7 = vld [vmem:[%s1358_s5 + $0x48] sm:$0xff]  ;;  %v595_v12 = vld [vmem:[%s1358_s5 + $0x50] sm:$0xff] }
  0x22   : > { %877 = vmatpush1.bf16.msra.mxu1 %v876_v54  ;;  %v605_v54 = vld [vmem:[%s1358_s5 + $0xa0] sm:$0xff]  ;;  %919 = vmatprep.subr.bf16.mxu0 %v918_v51  ;;  %v932_v10 = vpack.c.bf16 %v594_v7, %v593_v6  ;;  %v596_v13 = vld [vmem:[%s1358_s5 + $0x58] sm:$0xff]  ;;  %v598_v50 = vld [vmem:[%s1358_s5 + $0x68] sm:$0xff] }
  0x23   : > { %879 = vmatprep.subr.bf16.mxu1 %v878_v55  ;;  %v606_v55 = vld [vmem:[%s1358_s5 + $0xa8] sm:$0xff]  ;;  %v936_v16 = vpack.c.bf16 %v596_v13, %v595_v12  ;;  %v597_v49 = vld [vmem:[%s1358_s5 + $0x60] sm:$0xff]  ;;  %v615_v52 = vld [vmem:[%s1358_s5 + $0xf0] sm:$0xff] }
  0x24   : > { %v922_v57 = vpack.c.bf16 %v606_v55, %v605_v54  ;;  %v940_v51 = vpack.c.bf16 %v598_v50, %v597_v49  ;;  %v616_v53 = vld [vmem:[%s1358_s5 + $0xf8] sm:$0xff]  ;;  %v599_v55 = vld [vmem:[%s1358_s5 + $0x70] sm:$0xff]  ;;  %v476_v58 = vld [vmem:[%s1357_s4] sm:$0x3] }
  0x25   : > { %921 = vmatpush3.bf16.msra.mxu0 %v920_v56  ;;  %v942_v54 = vpack.c.bf16 %v616_v53, %v615_v52  ;;  %v600_v56 = vld [vmem:[%s1358_s5 + $0x78] sm:$0xff] }
  0x26   : > { %881 = vmatpush1.bf16.msra.mxu1 %v880_v60  ;;  %v607_v60 = vld [vmem:[%s1358_s5 + $0xb0] sm:$0xff]  ;;  %923 = vmatprep.subr.bf16.mxu0 %v922_v57  ;;  %v944_v57 = vpack.c.bf16 %v600_v56, %v599_v55 }
  0x27   : > { %883 = vmatprep.subr.bf16.mxu1 %v882_v61  ;;  %v608_v61 = vld [vmem:[%s1358_s5 + $0xb8] sm:$0xff] }
  0x28   : > { %v926_v63 = vpack.c.bf16 %v608_v61, %v607_v60  ;;  %v485_v60 = vrot.slane %v476_v58, %v298_v22 }
  0x29   : > { %925 = vmatpush3.bf16.msra.mxu0 %v924_v62 }
  0x2a   : > { %885 = vmatpush1.bf16.msra.mxu1 %v884_v2  ;;  %v609_v2 = vld [vmem:[%s1358_s5 + $0xc0] sm:$0xff]  ;;  %927 = vmatprep.subr.bf16.mxu0 %v926_v63 }
  0x2b   : > { %887 = vmatprep.subr.bf16.mxu1 %v886_v3  ;;  %v610_v3 = vld [vmem:[%s1358_s5 + $0xc8] sm:$0xff] }
  0x2c   : > { %v930_v5 = vpack.c.bf16 %v610_v3, %v609_v2 }
  0x2d   : > { %929 = vmatpush3.bf16.msra.mxu0 %v928_v4 }
  0x2e   : > { %889 = vmatpush1.bf16.msra.mxu1 %v888_v8  ;;  %v611_v8 = vld [vmem:[%s1358_s5 + $0xd0] sm:$0xff]  ;;  %931 = vmatprep.subr.bf16.mxu0 %v930_v5 }
  0x2f   : > { %891 = vmatprep.subr.bf16.mxu1 %v890_v9  ;;  %v612_v9 = vld [vmem:[%s1358_s5 + $0xd8] sm:$0xff] }
  0x30   : > { %v934_v11 = vpack.c.bf16 %v612_v9, %v611_v8 }
  0x31   : > { %933 = vmatpush3.bf16.msra.mxu0 %v932_v10 }
  0x32   : > { %893 = vmatpush1.bf16.msra.mxu1 %v892_v14  ;;  %v613_v14 = vld [vmem:[%s1358_s5 + $0xe0] sm:$0xff]  ;;  %935 = vmatprep.subr.bf16.mxu0 %v934_v11 }
  0x33   : > { %895 = vmatprep.subr.bf16.mxu1 %v894_v15  ;;  %v614_v15 = vld [vmem:[%s1358_s5 + $0xe8] sm:$0xff] }
  0x34   : > { %v938_v17 = vpack.c.bf16 %v614_v15, %v613_v14 }
  0x35   : > { %937 = vmatpush3.bf16.msra.mxu0 %v936_v16 }
  0x36   : > { %897 = vmatpush1.bf16.msra.mxu1 %v896_v20  ;;  %939 = vmatprep.subr.bf16.mxu0 %v938_v17  ;;  %v294_v20 = vsub.s32 0, %v293_v19 }
  0x37   : > { %899 = vmatprep.subr.bf16.mxu1 %v898_v21  ;;  %v290_v21 = vld [vmem:[%s1355_s2] sm:$0x3] }
  0x38   : > { %v295_v23 = vrot.slane %v290_v21, %v294_v20  ;;  %v299_v24 = vrot.slane %v290_v21, %v298_v22  ;;  %v481_v59 = vrot.slane %v476_v58, %v294_v20 }
  0x39   : > { %941 = vmatpush3.bf16.msra.mxu0 %v940_v51 }
  0x3a   : > { %901 = vmatpush1.bf16.msra.mxu1 %v900_v26  ;;  %943 = vmatprep.subr.bf16.mxu0 %v942_v54 }
  0x3b   : > { %903 = vmatprep.subr.bf16.mxu1 %v902_v27 }
  0x3d   : > { %945 = vmatpush3.bf16.msra.mxu0 %v944_v57 }
  0x3e   : > { %905 = vmatpush1.bf16.msra.mxu1 %v904_v32 }
  0x3f   : > { %907 = vmatprep.subr.bf16.mxu1 %v906_v33 }
  0x42   : > { %909 = vmatpush1.bf16.msra.mxu1 %v908_v36 }
  0x43   : > { %911 = vmatprep.subr.bf16.mxu1 %v910_v39 }
  0x46   : > { %913 = vmatpush1.bf16.msra.mxu1 %v912_v42 }
  0xe4   : > { %v381_v25 = vpop.f32.mrb[0].mxu0 }
  0xe5   : > { %v382_v26 = vadd.f32 %v381_v25, %v295_v23  ;;  %v383_v27 = vpop.f32.mrb[1].mxu0 }
  0xe6   : > { %v384_v28 = vadd.f32 %v383_v27, %v299_v24 }
  0xe7   : > { %v404_v31 = vmax.f32 %v382_v26, 0.0  ;;  %v710_v26 = vand.u32 127, %v292_v18 }
  0xe8   : > { %v387_v29 = vpop.f32.mrb[2].mxu0  ;;  %v405_v30 = vmax.f32 %v384_v28, 0.0 }
  0xe9   : > { %v388_v32 = vadd.f32 %v387_v29, %v295_v23  ;;  %v389_v33 = vpop.f32.mrb[3].mxu0  ;;  %vm719_vm1 = vcmp.ge.s32.totalorder %v710_v26, 4 }
  0xea   : > { %v390_v34 = vadd.f32 %v389_v33, %v299_v24  ;;  %552 = vmatprep.mubr.f32.mxu1 %v405_v30 }
  0xeb   : > { %553 = vmatmul.mubr.f32.vlgmr.msra.gmra.mrb[0].mxu1 %v404_v31  ;;  %v406_v37 = vmax.f32 %v388_v32, 0.0 }
  0xec   : > { %v407_v35 = vmax.f32 %v390_v34, 0.0  ;;  %v393_v36 = vpop.f32.mrb[4].mxu0 }
  0xed   : > { %v394_v38 = vadd.f32 %v393_v36, %v295_v23  ;;  %v395_v39 = vpop.f32.mrb[5].mxu0 }
  0xee   : > { %v396_v40 = vadd.f32 %v395_v39, %v299_v24  ;;  %558 = vmatprep.mubr.f32.mxu1 %v407_v35 }
  0xef   : > { %559 = vmatmul.mubr.f32.gmra.mrb[2].mxu1 %v406_v37  ;;  %v408_v43 = vmax.f32 %v394_v38, 0.0 }
  0xf0   : > { %v409_v41 = vmax.f32 %v396_v40, 0.0  ;;  %v399_v42 = vpop.f32.mrb[6].mxu0 }
  0xf1   : > { %v400_v44 = vadd.f32 %v399_v42, %v295_v23  ;;  %v401_v45 = vpop.f32.mrb[7].mxu0  ;;  %v799_v23 = vld [vmem:[%s1359_s6] ss:$0 sm:$0xff] }
  0xf2   : > { %v402_v46 = vadd.f32 %v401_v45, %v299_v24  ;;  %564 = vmatprep.mubr.f32.mxu1 %v409_v41 }
  0xf3   : > { %565 = vmatmul.mubr.f32.gmra.mrb[4].mxu1 %v408_v43  ;;  %v410_v48 = vmax.f32 %v400_v44, 0.0 }
  0xf4   : > { %v411_v47 = vmax.f32 %v402_v46, 0.0 }
  0xf6   : > { %570 = vmatprep.mubr.f32.mxu1 %v411_v47 }
  0xf7   : > { %571 = vmatmul.mubr.f32.gmra.mrb[6].mxu1 %v410_v48 }
 0x1be   : > { %v554_v61 = vpop.f32.mrb[0].mxu1 }
 0x1bf   : > { %v555_v62 = vadd.f32 %v554_v61, %v481_v59  ;;  %v556_v63 = vpop.f32.mrb[1].mxu1 }
 0x1c0   : > { %v557_v0 = vadd.f32 %v556_v63, %v485_v60 }
 0x1c1   : > { %v577_v3 = vmax.f32 %v555_v62, 0.0 }
 0x1c2   : > { %v578_v1 = vmax.f32 %v557_v0, 0.0  ;;  %v560_v2 = vpop.f32.mrb[2].mxu1 }
 0x1c3   : > { %v561_v4 = vadd.f32 %v560_v2, %v481_v59  ;;  %v562_v5 = vpop.f32.mrb[3].mxu1 }
 0x1c4   : > { %v563_v6 = vadd.f32 %v562_v5, %v485_v60  ;;  %688 = vmatprep.mubr.f32.mxu0 %v578_v1 }
 0x1c5   : > { %689 = vmatmul.mubr.f32.vlgmr.msra.gmra.mrb[8].mxu0 %v577_v3  ;;  %v579_v9 = vmax.f32 %v561_v4, 0.0 }
 0x1c6   : > { %v580_v7 = vmax.f32 %v563_v6, 0.0  ;;  %v566_v8 = vpop.f32.mrb[4].mxu1 }
 0x1c7   : > { %v567_v10 = vadd.f32 %v566_v8, %v481_v59  ;;  %v568_v11 = vpop.f32.mrb[5].mxu1 }
 0x1c8   : > { %v569_v12 = vadd.f32 %v568_v11, %v485_v60  ;;  %693 = vmatprep.mubr.f32.mxu0 %v580_v7 }
 0x1c9   : > { %694 = vmatmul.mubr.f32.gmra.mrb[10].mxu0 %v579_v9  ;;  %v581_v15 = vmax.f32 %v567_v10, 0.0 }
 0x1ca   : > { %v582_v13 = vmax.f32 %v569_v12, 0.0  ;;  %v572_v14 = vpop.f32.mrb[6].mxu1 }
 0x1cb   : > { %v573_v16 = vadd.f32 %v572_v14, %v481_v59  ;;  %v574_v17 = vpop.f32.mrb[7].mxu1 }
 0x1cc   : > { %v575_v19 = vadd.f32 %v574_v17, %v485_v60  ;;  %698 = vmatprep.mubr.f32.mxu0 %v582_v13 }
 0x1cd   : > { %699 = vmatmul.mubr.f32.gmra.mrb[12].mxu0 %v581_v15  ;;  %v583_v21 = vmax.f32 %v573_v16, 0.0 }
 0x1ce   : > { %v584_v20 = vmax.f32 %v575_v19, 0.0 }
 0x1d0   : > { %703 = vmatprep.mubr.f32.mxu0 %v584_v20 }
 0x1d1   : > { %704 = vmatmul.mubr.f32.gmra.mrb[14].mxu0 %v583_v21 }
 0x298   : > { %v834_v22 = vpop.f32.mrb[8].mxu0 }
 0x299   : > { %v835_v24 = vpop.f32.mrb[9].mxu0 }
 0x29a   : > { %v836_v25 = vadd.f32 %v835_v24, %v834_v22 }
 0x29c   : > { %v691_v27 = vadd.f32 %v836_v25, %v799_v23  ;;  %v837_v28 = vpop.f32.mrb[10].mxu0 }
 0x29d   : > { %v838_v29 = vpop.f32.mrb[11].mxu0 }
 0x29e   : > { %v711_v30 = vmax.f32 %v691_v27, -20.0  ;;  %v839_v31 = vadd.f32 %v838_v29, %v837_v28 }
 0x2a0   : > { %v715_v32 = vmin.f32 %v711_v30, 2.0  ;;  %v696_v33 = vadd.f32 %v839_v31, %v799_v23  ;;  %v840_v34 = vpop.f32.mrb[12].mxu0 }
 0x2a1   : > { %v841_v35 = vpop.f32.mrb[13].mxu0 }
 0x2a2   : > { %v722_v36 = vsel %vm719_vm1, %v715_v32, %v691_v27  ;;  %v712_v37 = vmax.f32 %v696_v33, -20.0  ;;  %v842_v38 = vadd.f32 %v841_v35, %v840_v34 }
 0x2a3   : > { %726 = vst [vmem:[%s280_s16] sm:$0xff] %v722_v36 }
 0x2a4   : > { %v716_v18 = vmin.f32 %v712_v37, 2.0  ;;  %v701_v39 = vadd.f32 %v842_v38, %v799_v23  ;;  %v843_v40 = vpop.f32.mrb[14].mxu0 }
 0x2a5   : > { %v844_v41 = vpop.f32.mrb[15].mxu0 }
 0x2a6   : > { %v723_v42 = vsel %vm719_vm1, %v716_v18, %v696_v33  ;;  %v713_v43 = vmax.f32 %v701_v39, -20.0  ;;  %v845_v44 = vadd.f32 %v844_v41, %v843_v40 }
 0x2a7   : > { %727 = vst [vmem:[%s280_s16 + $0x8] sm:$0xff] %v723_v42 }
 0x2a8   : > { %v717_v45 = vmin.f32 %v713_v43, 2.0  ;;  %v706_v46 = vadd.f32 %v845_v44, %v799_v23 }
 0x2aa   : > { %v724_v47 = vsel %vm719_vm1, %v717_v45, %v701_v39  ;;  %v714_v48 = vmax.f32 %v706_v46, -20.0 }
 0x2ab   : > { %728 = vst [vmem:[%s280_s16 + $0x10] sm:$0xff] %v724_v47 }
 0x2ac   : > { %v718_v49 = vmin.f32 %v714_v48, 2.0 }
 0x2ae   : > { %v725_v50 = vsel %vm719_vm1, %v718_v49, %v706_v46 }
 0x2af   : > { %729 = vst [vmem:[%s280_s16 + $0x18] sm:$0xff] %v725_v50 }
 0x2b0 PF: > { %s17_s24 = sadd.s32 1, %s961_s24  }
 0x2b1   : > { %p14_p4 = scmp.ge.s32.totalorder %s17_s24, 4  }
 0x2b3   :  { %16 = sbr.rel (!%p14_p4) target bundleno = 1 (0x1), region = 78 }

</bundles_post_ra>
